<compile_context>
chip_gen: v5e
topology: v5e:2x2
jax: 0.10.0
libtpu: 0.0.40
codegen_flags: <defaults>
</compile_context>

<pallas_src>
import functools

import jax
import jax.numpy as jnp
from jax.experimental import pallas as pl
from jax.experimental.pallas import tpu as pltpu

IN_FEATURES = 50
HIDDEN = 50
OUT_FEATURES = 1
HIDDEN_PAD = 64  # hidden zero-padded so the sublane dim is a multiple of 8

# lhs [M, K] x rhs [N, K] -> [M, N]  (contract last dim of both; "A @ B.T")
_NT_DIM_NUMBERS = (((1,), (1,)), ((), ()))


def _round_up(x, m):
    return (x + m - 1) // m * m


def _rul_kernel(x_ref, w1_ref, aux_ref, b2_ref, o_ref, *, mxu_dtype):
    """One batch tile.

    x_ref  : [TB, 50]        batch tile (features on lanes), dtype = x.dtype
    w1_ref : [64, 50]        fc1 weight, PyTorch [out, in], out-dim zero-padded
    aux_ref: [64, 2]  f32    column 0 = fc1 bias, column 1 = fc2 weight
    b2_ref : (1,) SMEM f32   fc2 bias scalar
    o_ref  : [1, TB]  f32    sigmoid output, batch on lanes (lane-dense store)
    """
    x = x_ref[...]
    w1 = w1_ref[...]
    if mxu_dtype is not None:            # opt-in bf16 MXU fast path
        x = x.astype(mxu_dtype)
        w1 = w1.astype(mxu_dtype)

    # fc1, computed transposed on the MXU:  hT[o, t] = sum_k w1[o, k] * x[t, k]
    h_t = jax.lax.dot_general(
        w1, x, _NT_DIM_NUMBERS, preferred_element_type=jnp.float32
    )                                                   # [64, TB] f32

    aux = aux_ref[...]
    b1 = aux[:, 0:1]                                    # [64, 1]
    w2 = aux[:, 1:2]                                    # [64, 1]

    h_t = jnp.maximum(h_t + b1, 0.0)                    # bias + ReLU (f32, dense)

    # fc2 as VPU multiply + sublane reduction (avoids a 1-lane-wide MXU matmul)
    y = jnp.sum(h_t * w2, axis=0, keepdims=True)        # [1, TB]
    y = jax.nn.sigmoid(y + b2_ref[0])                   # scalar bias from SMEM

    o_ref[...] = y.astype(o_ref.dtype)                  # lane-dense store


def _prep_params(w1, b1, w2, b2, mxu_dtype):
    """Zero-pad hidden 50->64 and reshape params into the kernel layouts."""
    pad = HIDDEN_PAD - HIDDEN
    w1p = jnp.pad(w1, ((0, pad), (0, 0))).astype(mxu_dtype)                        # [64, 50]
    b1c = jnp.pad(b1.reshape(HIDDEN, 1).astype(jnp.float32), ((0, pad), (0, 0)))   # [64, 1]
    w2c = jnp.pad(w2.reshape(HIDDEN, 1).astype(jnp.float32), ((0, pad), (0, 0)))   # [64, 1]
    auxp = jnp.concatenate([b1c, w2c], axis=1)                                     # [64, 2]
    b2p = b2.reshape(1).astype(jnp.float32)                                        # (1,)
    return w1p, auxp, b2p


@functools.partial(jax.jit, static_argnames=("block_batch", "use_bf16_mxu"))
def rul_regressor_forward(x, w1, b1, w2, b2, block_batch=8192, use_bf16_mxu=False):
    """x: [B, 50].  Params in PyTorch nn.Linear layout:
       w1 [50, 50], b1 [50], w2 [1, 50], b2 [1].  Returns [B, 1] float32."""
    B, F = x.shape
    assert F == IN_FEATURES

    mxu_dtype = jnp.bfloat16 if use_bf16_mxu else x.dtype
    w1p, auxp, b2p = _prep_params(w1, b1, w2, b2, mxu_dtype)

    # ---- batch tile selection -------------------------------------------
    # Multiple of 128 (lane-dense output row).  Capped at ceil(B/2) rounded
    # up so the grid always has >= 2 steps when B allows it (feeds both v7x
    # TensorCores).  Default 8192 keeps the lane-padded VMEM footprint
    # (2 x tb*128*itemsize x-buffers + ~hT temps) well under every
    # generation's budget.
    tb = min(_round_up(block_batch, 128), _round_up(pl.cdiv(B, 2), 128))
    if B < tb:
        # Degenerate small-B single-block case: pad the (tiny) input so the
        # block matches exactly.  Large B never pads x (ragged final block).
        x = jnp.pad(x, ((0, tb - B), (0, 0)))
    num_blocks = pl.cdiv(x.shape[0], tb)
    bp_out = num_blocks * tb                     # padded output width (tiny)

    # VMEM budget using the *lane-padded* footprint of the pipelined buffers.
    x_itemsize = jnp.dtype(x.dtype).itemsize
    vmem_bytes = (
        2 * tb * 128 * x_itemsize        # x double buffer (50 lanes pad to 128)
        + 4 * HIDDEN_PAD * tb * 4        # hT (f32) + elementwise temporaries
        + 2 * 8 * tb * 4                 # output double buffer (1 -> 8 sublanes)
        + (2 << 20)                      # weights, scalars, headroom
    )
    # 32 MiB floor (scoped default on v6e/v7x, safe on v5e's 128 MiB physical),
    # 56 MiB cap to stay inside v7x's 64 MiB/TC.
    vmem_limit = int(min(max(vmem_bytes, 32 << 20), 56 << 20))

    kernel = functools.partial(
        _rul_kernel, mxu_dtype=jnp.bfloat16 if use_bf16_mxu else None)

    out = pl.pallas_call(
        kernel,
        out_shape=jax.ShapeDtypeStruct((1, bp_out), jnp.float32),
        grid_spec=pltpu.PrefetchScalarGridSpec(
            num_scalar_prefetch=0,
            grid=(num_blocks,),
            in_specs=[
                pl.BlockSpec((tb, IN_FEATURES), lambda i: (i, 0)),          # x (pipelined, ragged tail OK)
                pl.BlockSpec((HIDDEN_PAD, IN_FEATURES), lambda i: (0, 0)),  # w1 (loaded once)
                pl.BlockSpec((HIDDEN_PAD, 2), lambda i: (0, 0)),            # [b1 | w2] (loaded once)
                pl.BlockSpec(memory_space=pltpu.MemorySpace.SMEM),          # b2 scalar
            ],
            out_specs=pl.BlockSpec((1, tb), lambda i: (0, i)),              # lane-dense out
        ),
        compiler_params=pltpu.CompilerParams(
            dimension_semantics=("parallel",),   # megacore / dual-TC sharding
            vmem_limit_bytes=vmem_limit,
        ),
    )(x, w1p, auxp, b2p)

    return out[0, :B].reshape(B, OUT_FEATURES)


def init_params(key):
    """Deterministic synthetic params in PyTorch nn.Linear layout ([out, in])."""
    k1, k2, k3, k4 = jax.random.split(key, 4)
    bound1 = 1.0 / (IN_FEATURES ** 0.5)
    bound2 = 1.0 / (HIDDEN ** 0.5)
    w1 = jax.random.uniform(k1, (HIDDEN, IN_FEATURES), jnp.float32, -bound1, bound1)
    b1 = jax.random.uniform(k2, (HIDDEN,), jnp.float32, -bound1, bound1)
    w2 = jax.random.uniform(k3, (OUT_FEATURES, HIDDEN), jnp.float32, -bound2, bound2)
    b2 = jax.random.uniform(k4, (OUT_FEATURES,), jnp.float32, -bound2, bound2)
    return w1, b1, w2, b2


def _reference(x, w1, b1, w2, b2):
    h = jnp.maximum(x @ w1.T + b1, 0.0)
    return jax.nn.sigmoid(h @ w2.T + b2)


if __name__ == "__main__":
    key = jax.random.PRNGKey(0)
    k_x, k_x2, k_x3, k_p = jax.random.split(key, 4)
    w1, b1, w2, b2 = init_params(k_p)

    # 1) Small single-block batch (B < tile -> cheap pad path).
    batch = 8
    x = jax.random.normal(k_x, (batch, IN_FEATURES), jnp.float32)
    out = jax.block_until_ready(rul_regressor_forward(x, w1, b1, w2, b2))
    ref = _reference(x, w1, b1, w2, b2)
    assert out.shape == (batch, OUT_FEATURES)
    assert jnp.allclose(out, ref, atol=1e-4, rtol=1e-4)

    # 2) Multi-step pipelined grid with a ragged (unpadded) final input block.
    batch2 = 300
    x2 = jax.random.normal(k_x2, (batch2, IN_FEATURES), jnp.float32)
    out2 = jax.block_until_ready(
        rul_regressor_forward(x2, w1, b1, w2, b2, block_batch=128))
    ref2 = _reference(x2, w1, b1, w2, b2)
    assert out2.shape == (batch2, OUT_FEATURES)
    assert jnp.allclose(out2, ref2, atol=1e-4, rtol=1e-4)

    # 3) Default-tile path: tile auto-capped to ceil(B/2) so grid has 2 steps.
    batch3 = 1000
    x3 = jax.random.normal(k_x3, (batch3, IN_FEATURES), jnp.float32)
    out3 = jax.block_until_ready(rul_regressor_forward(x3, w1, b1, w2, b2))
    ref3 = _reference(x3, w1, b1, w2, b2)
    assert out3.shape == (batch3, OUT_FEATURES)
    assert jnp.allclose(out3, ref3, atol=1e-4, rtol=1e-4)

    # 4) Opt-in bf16 MXU fast path (looser tolerance: single-pass MXU matmul).
    out4 = jax.block_until_ready(
        rul_regressor_forward(x3, w1, b1, w2, b2, use_bf16_mxu=True))
    assert out4.shape == (batch3, OUT_FEATURES)
    assert jnp.allclose(out4, ref3, atol=3e-2, rtol=3e-2)

    print("KERNEL_OK")
</pallas_src>

<mosaic_0001>
module attributes {stable_mosaic.version = 11 : i64} {
  func.func @_rul_kernel(%arg0: i32, %arg1: memref<128x50xf32, #tpu.memory_space<vmem>>, %arg2: memref<64x50xf32, #tpu.memory_space<vmem>>, %arg3: memref<64x2xf32, #tpu.memory_space<vmem>>, %arg4: memref<1xf32, #tpu.memory_space<smem>>, %arg5: memref<1x128xf32, #tpu.memory_space<vmem>>) attributes {dimension_semantics = [#tpu.dimension_semantics<parallel>], iteration_bounds = array<i64: 1>, scalar_prefetch = 0 : i64, scratch_operands = 0 : i64, tpu.core_type = #tpu.core_type<tc>, window_params = [{transform_indices = @transform_0, window_bounds = array<i64: 128, 50>}, {pipeline_mode = #tpu.pipeline_mode<synchronous>, transform_indices = @transform_1, window_bounds = array<i64: 64, 50>}, {pipeline_mode = #tpu.pipeline_mode<synchronous>, transform_indices = @transform_2, window_bounds = array<i64: 64, 2>}, {transform_indices = @transform_3, window_bounds = array<i64: 1>}, {transform_indices = @transform_4, window_bounds = array<i64: 1, 128>}]} {
    %c0 = arith.constant 0 : index
    %c0_0 = arith.constant 0 : index
    %0 = vector.load %arg1[%c0, %c0_0] : memref<128x50xf32, #tpu.memory_space<vmem>>, vector<128x50xf32>
    %c0_1 = arith.constant 0 : index
    %c0_2 = arith.constant 0 : index
    %1 = vector.load %arg2[%c0_1, %c0_2] : memref<64x50xf32, #tpu.memory_space<vmem>>, vector<64x50xf32>
    %cst = arith.constant dense<0.000000e+00> : vector<64x128xf32>
    %2 = tpu.matmul %1, %0, %cst {dimension_numbers = #tpu.dot_dimension_numbers<[1], [1], [0], [0], [0, 0, 1, 0], [], []>} : vector<64x50xf32>, vector<128x50xf32>, vector<64x128xf32> -> vector<64x128xf32>
    %c0_3 = arith.constant 0 : index
    %c0_4 = arith.constant 0 : index
    %3 = vector.load %arg3[%c0_3, %c0_4] : memref<64x2xf32, #tpu.memory_space<vmem>>, vector<64x2xf32>
    %4 = vector.extract_strided_slice %3 {offsets = [0, 0], sizes = [64, 1], strides = [1, 1]} : vector<64x2xf32> to vector<64x1xf32>
    %5 = vector.extract_strided_slice %3 {offsets = [0, 1], sizes = [64, 1], strides = [1, 1]} : vector<64x2xf32> to vector<64x1xf32>
    %6 = vector.broadcast %4 : vector<64x1xf32> to vector<64x128xf32>
    %7 = arith.addf %2, %6 : vector<64x128xf32>
    %cst_5 = arith.constant 0.000000e+00 : f32
    %8 = vector.broadcast %cst_5 : f32 to vector<64x128xf32>
    %9 = arith.maximumf %7, %8 : vector<64x128xf32>
    %10 = vector.broadcast %5 : vector<64x1xf32> to vector<64x128xf32>
    %11 = arith.mulf %9, %10 : vector<64x128xf32>
    %cst_6 = arith.constant dense<0.000000e+00> : vector<128xf32>
    %12 = vector.multi_reduction <add>, %11, %cst_6 [0] : vector<64x128xf32> to vector<128xf32>
    %13 = vector.shape_cast %12 : vector<128xf32> to vector<1x128xf32>
    %c0_7 = arith.constant 0 : index
    %14 = memref.load %arg4[%c0_7] : memref<1xf32, #tpu.memory_space<smem>>
    %15 = vector.broadcast %14 : f32 to vector<1x128xf32>
    %16 = arith.addf %13, %15 : vector<1x128xf32>
    %17 = arith.negf %16 : vector<1x128xf32>
    %18 = math.exp %17 : vector<1x128xf32>
    %cst_8 = arith.constant 1.000000e+00 : f32
    %19 = vector.broadcast %cst_8 : f32 to vector<1x128xf32>
    %20 = arith.addf %19, %18 : vector<1x128xf32>
    %21 = arith.divf %19, %20 : vector<1x128xf32>
    %c0_9 = arith.constant 0 : index
    %c0_10 = arith.constant 0 : index
    %22 = vector.load %arg5[%c0_9, %c0_10] : memref<1x128xf32, #tpu.memory_space<vmem>>, vector<1x128xf32>
    tpu.vector_store %arg5[%c0_9, %c0_10], %21 {strides = array<i32>} : memref<1x128xf32, #tpu.memory_space<vmem>>, vector<1x128xf32>,
    return
  }
  func.func @transform_0(%arg0: i32) -> (i32, i32) {
    %c0_i32 = arith.constant 0 : i32
    %c0_i32_0 = arith.constant 0 : i32
    return %arg0, %c0_i32 : i32, i32
  }
  func.func @transform_1(%arg0: i32) -> (i32, i32) {
    %c0_i32 = arith.constant 0 : i32
    %c0_i32_0 = arith.constant 0 : i32
    %c0_i32_1 = arith.constant 0 : i32
    return %c0_i32, %c0_i32_0 : i32, i32
  }
  func.func @transform_2(%arg0: i32) -> (i32, i32) {
    %c0_i32 = arith.constant 0 : i32
    %c0_i32_0 = arith.constant 0 : i32
    %c0_i32_1 = arith.constant 0 : i32
    return %c0_i32, %c0_i32_0 : i32, i32
  }
  func.func @transform_3(%arg0: i32) -> i32 {
    %c0_i32 = arith.constant 0 : i32
    %c0_i32_0 = arith.constant 0 : i32
    return %c0_i32 : i32
  }
  func.func @transform_4(%arg0: i32) -> (i32, i32) {
    %c0_i32 = arith.constant 0 : i32
    %c0_i32_0 = arith.constant 0 : i32
    return %c0_i32, %arg0 : i32, i32
  }
}

</mosaic_0001>

<bundles_post_ra>
// kernel: rul_regressor_forward.1
= control target key start
LH: loop header
LB: loop body
LE: loop exit
PB: predicated region body
PF: predicated region fallthrough
CT: control target
= control target key end

     0   :  { %vm90_vm0 = vcmask 408576   ;;  %v380_v7 = vmov 0   ;;  %v381_v15 = vmov 1   ;;  %s594_s0 = inlined_call_operand.vmem [shape: f32[128,50], index: 0, kind: input, shape index: {}]   ;;  %s595_s2 = inlined_call_operand.vmem [shape: f32[64,2], index: 2, kind: input, shape index: {}]   ;;  %s596_s1 = inlined_call_operand.vmem [shape: f32[64,50], index: 1, kind: input, shape index: {}]   ;;  %s597_s3 = inlined_call_operand.<no memory space> [shape: f32[1], index: 3, kind: input, shape index: {}]   ;;  %s598_s4 = inlined_call_operand.vmem [shape: f32[1,128], index: 4, kind: output, shape index: {}]  }
   0x1   :  { %v33_v0 = vld [vmem:[%s594_s0 + $0x78] sm:$0xff]  ;;  %v32_v1 = vld [vmem:[%s594_s0 + $0x70] sm:$0xff]  ;;  %v31_v2 = vld [vmem:[%s594_s0 + $0x68] sm:$0xff]  ;;  %368 = vset.pattern.permute.xlu1 %v380_v7  ;;  %367 = vset.pattern.permute.xlu0 %v380_v7 }
   0x2   :  { %292 = vmatpush.xpose.msk.msra.mxu0 %vm90_vm0, %v33_v0  ;;  %317 = vmatpush.xpose.msk.msra.mxu1 %vm90_vm0, %v33_v0  ;;  %v30_v3 = vld [vmem:[%s594_s0 + $0x60] sm:$0xff]  ;;  %v29_v4 = vld [vmem:[%s594_s0 + $0x58] sm:$0xff]  ;;  %v44_v5 = vld [vmem:[%s595_s2 + $0x10] sm:$0xff] }
   0x3   :  { %318 = vmatpush.xpose.msk.msra.mxu2 %vm90_vm0, %v33_v0  ;;  %319 = vmatpush.xpose.msk.msra.mxu3 %vm90_vm0, %v33_v0  ;;  %v42_v6 = vld [vmem:[%s595_s2] sm:$0xff]  ;;  %v28_v8 = vld [vmem:[%s594_s0 + $0x50] sm:$0xff]  ;;  %v27_v9 = vld [vmem:[%s594_s0 + $0x48] sm:$0xff] }
   0x4   :  { %62 = vperm.xlu1 %368, %v44_v5   ;;  %52 = vperm.xlu0 %367, %v42_v6   ;;  %v45_v10 = vld [vmem:[%s595_s2 + $0x18] sm:$0xff]  ;;  %v43_v11 = vld [vmem:[%s595_s2 + $0x8] sm:$0xff]  ;;  %v26_v12 = vld [vmem:[%s594_s0 + $0x40] sm:$0xff] }
   0x5   :  { %v25_v13 = vld [vmem:[%s594_s0 + $0x38] sm:$0xff]  ;;  %v483_v14 = vld [vmem:[%s595_s2 + $0x20] sm:$0xff]  ;;  %369 = vset.pattern.permute.xlu2 %v381_v15  ;;  %v24_v16 = vld [vmem:[%s594_s0 + $0x30] sm:$0xff] }
   0x6   :  { %293 = vmatpush.xpose.msk.msra.mxu0 %vm90_vm0, %v32_v1  ;;  %320 = vmatpush.xpose.msk.msra.mxu1 %vm90_vm0, %v32_v1  ;;  %v23_v17 = vld [vmem:[%s594_s0 + $0x28] sm:$0xff]  ;;  %v48_v18 = vld [vmem:[%s595_s2 + $0x30] sm:$0xff]  ;;  %v22_v19 = vld [vmem:[%s594_s0 + $0x20] sm:$0xff] }
   0x7   :  { %321 = vmatpush.xpose.msk.msra.mxu2 %vm90_vm0, %v32_v1  ;;  %322 = vmatpush.xpose.msk.msra.mxu3 %vm90_vm0, %v32_v1  ;;  %v21_v20 = vld [vmem:[%s594_s0 + $0x18] sm:$0xff]  ;;  %v20_v22 = vld [vmem:[%s594_s0 + $0x10] sm:$0xff]  ;;  %v47_v23 = vld [vmem:[%s595_s2 + $0x28] sm:$0xff] }
   0x8   :  { %213 = vperm.xlu2 %369, %v42_v6   ;;  %v49_v21 = vld [vmem:[%s595_s2 + $0x38] sm:$0xff]  ;;  %v19_v24 = vld [vmem:[%s594_s0 + $0x8] sm:$0xff]  ;;  %v18_v25 = vld [vmem:[%s594_s0] sm:$0xff] }
   0x9   :  { %v34_v26 = vld [vmem:[%s596_s1] sm:$0xff]  ;;  %v36_v27 = vld [vmem:[%s596_s1 + $0x10] sm:$0xff]  ;;  %v35_v30 = vld [vmem:[%s596_s1 + $0x8] sm:$0xff] }
   0xa   :  { %294 = vmatpush.xpose.msk.msra.mxu0 %vm90_vm0, %v31_v2  ;;  %323 = vmatpush.xpose.msk.msra.mxu1 %vm90_vm0, %v31_v2  ;;  %v38_v28 = vld [vmem:[%s596_s1 + $0x20] sm:$0xff]  ;;  %v40_v29 = vld [vmem:[%s596_s1 + $0x30] sm:$0xff]  ;;  %v37_v31 = vld [vmem:[%s596_s1 + $0x18] sm:$0xff] }
   0xb   :  { %324 = vmatpush.xpose.msk.msra.mxu2 %vm90_vm0, %v31_v2  ;;  %325 = vmatpush.xpose.msk.msra.mxu3 %vm90_vm0, %v31_v2  ;;  %v39_v32 = vld [vmem:[%s596_s1 + $0x28] sm:$0xff]  ;;  %v41_v33 = vld [vmem:[%s596_s1 + $0x38] sm:$0xff] }
   0xc   :  { %67 = vperm.xlu1 %368, %v45_v10   ;;  %57 = vperm.xlu0 %367, %v43_v11  }
   0xe   :  { %295 = vmatpush.xpose.msk.msra.mxu0 %vm90_vm0, %v30_v3  ;;  %326 = vmatpush.xpose.msk.msra.mxu1 %vm90_vm0, %v30_v3 }
   0xf   :  { %327 = vmatpush.xpose.msk.msra.mxu2 %vm90_vm0, %v30_v3  ;;  %328 = vmatpush.xpose.msk.msra.mxu3 %vm90_vm0, %v30_v3 }
  0x10   :  { %217 = vperm.xlu2 %369, %v43_v11  }
  0x12   :  { %296 = vmatpush.xpose.msk.msra.mxu0 %vm90_vm0, %v29_v4  ;;  %329 = vmatpush.xpose.msk.msra.mxu1 %vm90_vm0, %v29_v4 }
  0x13   :  { %330 = vmatpush.xpose.msk.msra.mxu2 %vm90_vm0, %v29_v4  ;;  %331 = vmatpush.xpose.msk.msra.mxu3 %vm90_vm0, %v29_v4 }
  0x14   :  { %370 = vset.pattern.permute.xlu1 %v381_v15  ;;  %72 = vperm.xlu0 %367, %v483_v14  }
  0x15   :  { %221 = vperm.xlu1 %370, %v44_v5  }
  0x16   :  { %297 = vmatpush.xpose.msk.msra.mxu0 %vm90_vm0, %v28_v8  ;;  %332 = vmatpush.xpose.msk.msra.mxu1 %vm90_vm0, %v28_v8 }
  0x17   :  { %333 = vmatpush.xpose.msk.msra.mxu2 %vm90_vm0, %v28_v8  ;;  %334 = vmatpush.xpose.msk.msra.mxu3 %vm90_vm0, %v28_v8 }
  0x18   :  { %371 = vset.pattern.permute.xlu2 %v380_v7 }
  0x19   :  { %77 = vperm.xlu2 %371, %v47_v23  }
  0x1a   :  { %298 = vmatpush.xpose.msk.msra.mxu0 %vm90_vm0, %v27_v9  ;;  %335 = vmatpush.xpose.msk.msra.mxu1 %vm90_vm0, %v27_v9 }
  0x1b   :  { %336 = vmatpush.xpose.msk.msra.mxu2 %vm90_vm0, %v27_v9  ;;  %337 = vmatpush.xpose.msk.msra.mxu3 %vm90_vm0, %v27_v9 }
  0x1c   :  { %372 = vset.pattern.permute.xlu0 %v381_v15 }
  0x1d   :  { %373 = vset.pattern.permute.xlu1 %v380_v7  ;;  %225 = vperm.xlu0 %372, %v45_v10  }
  0x1e   :  { %299 = vmatpush.xpose.msk.msra.mxu0 %vm90_vm0, %v26_v12  ;;  %338 = vmatpush.xpose.msk.msra.mxu1 %vm90_vm0, %v26_v12 }
  0x1f   :  { %339 = vmatpush.xpose.msk.msra.mxu2 %vm90_vm0, %v26_v12  ;;  %340 = vmatpush.xpose.msk.msra.mxu3 %vm90_vm0, %v26_v12 }
  0x20   :  { %82 = vperm.xlu1 %373, %v48_v18  }
  0x21   :  { %374 = vset.pattern.permute.xlu2 %v381_v15 }
  0x22   :  { %300 = vmatpush.xpose.msk.msra.mxu0 %vm90_vm0, %v25_v13  ;;  %341 = vmatpush.xpose.msk.msra.mxu1 %vm90_vm0, %v25_v13 }
  0x23   :  { %342 = vmatpush.xpose.msk.msra.mxu2 %vm90_vm0, %v25_v13  ;;  %343 = vmatpush.xpose.msk.msra.mxu3 %vm90_vm0, %v25_v13 }
  0x24   :  { %229 = vperm.xlu2 %374, %v483_v14  }
  0x25   :  { %237 = vperm.xlu0 %372, %v48_v18  }
  0x26   :  { %301 = vmatpush.xpose.msk.msra.mxu0 %vm90_vm0, %v24_v16  ;;  %344 = vmatpush.xpose.msk.msra.mxu1 %vm90_vm0, %v24_v16 }
  0x27   :  { %345 = vmatpush.xpose.msk.msra.mxu2 %vm90_vm0, %v24_v16  ;;  %346 = vmatpush.xpose.msk.msra.mxu3 %vm90_vm0, %v24_v16 }
  0x28   :  { %87 = vperm.xlu1 %373, %v49_v21  }
  0x2a   :  { %302 = vmatpush.xpose.msk.msra.mxu0 %vm90_vm0, %v23_v17  ;;  %347 = vmatpush.xpose.msk.msra.mxu1 %vm90_vm0, %v23_v17 }
  0x2b   :  { %348 = vmatpush.xpose.msk.msra.mxu2 %vm90_vm0, %v23_v17  ;;  %349 = vmatpush.xpose.msk.msra.mxu3 %vm90_vm0, %v23_v17 }
  0x2c   :  { %233 = vperm.xlu2 %374, %v47_v23  }
  0x2e   :  { %303 = vmatpush.xpose.msk.msra.mxu0 %vm90_vm0, %v22_v19  ;;  %350 = vmatpush.xpose.msk.msra.mxu1 %vm90_vm0, %v22_v19 }
  0x2f   :  { %351 = vmatpush.xpose.msk.msra.mxu2 %vm90_vm0, %v22_v19  ;;  %352 = vmatpush.xpose.msk.msra.mxu3 %vm90_vm0, %v22_v19 }
  0x30   :  { %375 = vset.pattern.permute.xlu1 %v381_v15 }
  0x31   :  { %241 = vperm.xlu1 %375, %v49_v21  }
  0x32   :  { %304 = vmatpush.xpose.msk.msra.mxu0 %vm90_vm0, %v21_v20  ;;  %353 = vmatpush.xpose.msk.msra.mxu1 %vm90_vm0, %v21_v20 }
  0x33   :  { %354 = vmatpush.xpose.msk.msra.mxu2 %vm90_vm0, %v21_v20  ;;  %355 = vmatpush.xpose.msk.msra.mxu3 %vm90_vm0, %v21_v20 }
  0x36   :  { %305 = vmatpush.xpose.msk.msra.mxu0 %vm90_vm0, %v20_v22  ;;  %356 = vmatpush.xpose.msk.msra.mxu1 %vm90_vm0, %v20_v22 }
  0x37   :  { %357 = vmatpush.xpose.msk.msra.mxu2 %vm90_vm0, %v20_v22  ;;  %358 = vmatpush.xpose.msk.msra.mxu3 %vm90_vm0, %v20_v22 }
  0x3a   :  { %306 = vmatpush.xpose.msk.msra.mxu0 %vm90_vm0, %v19_v24  ;;  %359 = vmatpush.xpose.msk.msra.mxu1 %vm90_vm0, %v19_v24 }
  0x3b   :  { %360 = vmatpush.xpose.msk.msra.mxu2 %vm90_vm0, %v19_v24  ;;  %361 = vmatpush.xpose.msk.msra.mxu3 %vm90_vm0, %v19_v24 }
  0x3e   :  { %307 = vmatpush.xpose.msk.msra.mxu0 %vm90_vm0, %v18_v25  ;;  %362 = vmatpush.xpose.msk.msra.mxu1 %vm90_vm0, %v18_v25 }
  0x3f   :  { %363 = vmatpush.xpose.msk.msra.mxu2 %vm90_vm0, %v18_v25  ;;  %364 = vmatpush.xpose.msk.msra.mxu3 %vm90_vm0, %v18_v25 }
  0x41   :  { %308 = vmatmul.msk.f32.vlgmr.msra.gmra.mxu0 %vm90_vm0, %v34_v26  ;;  %310 = vmatmul.msk.f32.vlgmr.msra.gmra.mxu1 %vm90_vm0, %v36_v27 }
  0x42   :  { %312 = vmatmul.msk.f32.vlgmr.msra.gmra.mxu2 %vm90_vm0, %v38_v28  ;;  %314 = vmatmul.msk.f32.vlgmr.msra.gmra.mxu3 %vm90_vm0, %v40_v29 }
  0x49   :  { %309 = vmatmul.msk.f32.gmra.mxu0 %vm90_vm0, %v35_v30  ;;  %311 = vmatmul.msk.f32.gmra.mxu1 %vm90_vm0, %v37_v31  ;;  %v266_v30 = vstv %s597_s3 }
  0x4a   :  { %313 = vmatmul.msk.f32.gmra.mxu2 %vm90_vm0, %v39_v32  ;;  %315 = vmatmul.msk.f32.gmra.mxu3 %vm90_vm0, %v41_v33 }
  0x62   :  { %v214_v35 = vpop.permute.xlu2 %213 }
  0x6a   :  { %v218_v38 = vpop.permute.xlu2 %217 }
  0x73   :  { %v78_v41 = vpop.permute.xlu2 %77 }
  0x76   :  { %v63_v34 = vpop.permute.xlu1 %62  ;;  %v53_v36 = vpop.permute.xlu0 %52 }
  0x7e   :  { %v68_v37 = vpop.permute.xlu1 %67  ;;  %v58_v39 = vpop.permute.xlu0 %57 }
  0x7f   :  { %v230_v56 = vpop.permute.xlu2 %229 }
  0x86   :  { %v73_v44 = vpop.permute.xlu0 %72 }
  0x87   :  { %v222_v40 = vpop.permute.xlu1 %221  ;;  %v234_v15 = vpop.permute.xlu2 %233 }
  0x8f   :  { %v226_v55 = vpop.permute.xlu0 %225 }
  0x92   :  { %v83_v45 = vpop.permute.xlu1 %82 }
  0x97   :  { %v238_v14 = vpop.permute.xlu0 %237 }
  0x9a   :  { %v88_v63 = vpop.permute.xlu1 %87 }
  0xa3   :  { %v242_v19 = vpop.permute.xlu1 %241 }
  0xbe   :  { %v180_v42 = vpop.f32.mrf.mxu0  ;;  %v186_v43 = vpop.f32.mrf.mxu1 }
  0xbf   :  { %v181_v46 = vadd.f32 %v180_v42, %v53_v36  ;;  %v187_v47 = vadd.f32 %v186_v43, %v63_v34 }
  0xc1   :  { %v204_v52 = vmax.f32 %v181_v46, 0.0  ;;  %v206_v57 = vmax.f32 %v187_v47, 0.0 }
  0xc3   :  { %v244_v60 = vmul.f32 %v214_v35, %v204_v52  ;;  %v246_v0 = vmul.f32 %v222_v40, %v206_v57 }
  0xc5   :  { %v192_v48 = vpop.f32.mrf.mxu2  ;;  %v198_v49 = vpop.f32.mrf.mxu3 }
  0xc6   :  { %v183_v50 = vpop.f32.mrf.mxu0  ;;  %v189_v51 = vpop.f32.mrf.mxu1  ;;  %v193_v58 = vadd.f32 %v192_v48, %v73_v44  ;;  %v199_v2 = vadd.f32 %v198_v49, %v83_v45 }
  0xc7   :  { %v184_v53 = vadd.f32 %v183_v50, %v58_v39  ;;  %v190_v54 = vadd.f32 %v189_v51, %v68_v37 }
  0xc8   :  { %v208_v1 = vmax.f32 %v193_v58, 0.0  ;;  %v210_v12 = vmax.f32 %v199_v2, 0.0 }
  0xc9   :  { %v205_v59 = vmax.f32 %v184_v53, 0.0  ;;  %v207_v62 = vmax.f32 %v190_v54, 0.0 }
  0xca   :  { %v248_v11 = vmul.f32 %v230_v56, %v208_v1  ;;  %v250_v20 = vmul.f32 %v238_v14, %v210_v12 }
  0xcb   :  { %v245_v61 = vmul.f32 %v218_v38, %v205_v59  ;;  %v247_v7 = vmul.f32 %v226_v55, %v207_v62 }
  0xcd   :  { %v252_v3 = vadd.f32 %v245_v61, %v244_v60  ;;  %v195_v4 = vpop.f32.mrf.mxu2  ;;  %v201_v5 = vpop.f32.mrf.mxu3 }
  0xce   :  { %v196_v6 = vadd.f32 %v195_v4, %v78_v41  ;;  %v202_v9 = vadd.f32 %v201_v5, %v88_v63 }
  0xcf   :  { %v253_v8 = vadd.f32 %v252_v3, %v246_v0 }
  0xd0   :  { %v209_v10 = vmax.f32 %v196_v6, 0.0  ;;  %v211_v18 = vmax.f32 %v202_v9, 0.0 }
  0xd1   :  { %v254_v13 = vadd.f32 %v253_v8, %v247_v7 }
  0xd2   :  { %v249_v16 = vmul.f32 %v234_v15, %v209_v10  ;;  %v251_v22 = vmul.f32 %v242_v19, %v211_v18 }
  0xd3   :  { %v255_v17 = vadd.f32 %v254_v13, %v248_v11 }
  0xd5   :  { %v256_v21 = vadd.f32 %v255_v17, %v249_v16 }
  0xd7   :  { %v257_v23 = vadd.f32 %v256_v21, %v250_v20 }
  0xd9   :  { %v258_v24 = vadd.f32 %v257_v23, %v251_v22 }
  0xdb   :  { %v259_v25 = vrot.slane %v258_v24, 4 }
  0xdd   :  { %v260_v26 = vadd.f32 %v259_v25, %v258_v24 }
  0xdf   :  { %v261_v27 = vrot.slane %v260_v26, 2 }
  0xe1   :  { %v262_v28 = vadd.f32 %v261_v27, %v260_v26 }
  0xe3   :  { %v263_v29 = vrot.slane %v262_v28, 1 }
  0xe5   :  { %v264_v31 = vadd.f32 %v263_v29, %v262_v28 }
  0xe7   :  { %v267_v32 = vadd.f32 %v266_v30, %v264_v31 }
  0xe9   :  { %v316_v33 = vmul.f32 -1.442695, %v267_v32 }
  0xeb   :  { %376 = vpow2.f32 %v316_v33 }
  0xf1   :  { %v377_v34 = vpop.eup %376 }
  0xf2   :  { %v271_v35 = vadd.f32 1.0, %v377_v34 }
  0xf4   :  { %378 = vrcp.f32 %v271_v35  ;;  %v283_v39 = vand.u32 2147483648, %v271_v35  ;;  %v281_v41 = vand.u32 2147483647, %v271_v35  ;;  %vm277_vm2 = vweird.f32 %v271_v35 }
  0xf6   :  { %v284_v43 = vor.u32 1.1754944e-38, %v283_v39  ;;  %vm282_vm4 = vcmp.eq.f32.partialorder %v281_v41, 8.507059e+37 }
  0xfa   :  { %v379_v36 = vpop.eup %378 }
  0xfb   :  { %v273_v37 = vmul.f32 %v379_v36, %v271_v35  ;;  %vm278_vm1 = vweird.f32 %v379_v36 }
  0xfc   :  { %vm279_vm3 = vmor %vm277_vm2, %vm278_vm1 }
  0xfd   :  { %v274_v38 = vsub.f32 1.0, %v273_v37 }
  0xff   :  { %v275_v40 = vmul.f32 %v379_v36, %v274_v38 }
 0x101   :  { %v276_v42 = vadd.f32 %v379_v36, %v275_v40 }
 0x103   :  { %v280_v44 = vsel %vm279_vm3, %v379_v36, %v276_v42 }
 0x104   :  { %v285_v45 = vsel %vm282_vm4, %v284_v43, %v280_v44 }
 0x105   :  { %287 = vst [vmem:[%s598_s4] sm:$0x1] %v285_v45 }

</bundles_post_ra>
